<compile_context>
chip_gen: v5e
topology: v5e:2x2
jax: 0.10.0
libtpu: 0.0.40
codegen_flags: <defaults>
</compile_context>

<pallas_src>
import functools

import jax
import jax.numpy as jnp
from jax.experimental import pallas as pl
from jax.experimental.pallas import tpu as pltpu

LN_EPS = 1e-5
NEG_INF = -1e9  # finite (robust) additive mask value


def _layernorm(v, g, b):
    # v: [..., D] f32; g/b broadcastable to v
    mu = jnp.mean(v, axis=-1, keepdims=True)
    var = jnp.mean((v - mu) ** 2, axis=-1, keepdims=True)
    return (v - mu) * jax.lax.rsqrt(var + LN_EPS) * g + b


# ----------------------------------------------------------------------------- kernels
def transformer_kernel(prompts_ref, pos_ref,
                       ln1g_ref, ln1b_ref, wqkv_ref, bqkv_ref, wo_ref, bo_ref,
                       ln2g_ref, ln2b_ref, wfc_ref, bfc_ref, wpr_ref, bpr_ref,
                       x_ref, *, num_heads):
    layer = pl.program_id(1)

    @pl.when(layer == 0)
    def _():
        # x = prompts + positional_embedding  (done once per batch row)
        x_ref[...] = prompts_ref[...] + pos_ref[...][None]

    x = x_ref[0]                       # [L, D] f32, VMEM-resident across all layers
    L, D = x.shape
    H = num_heads
    Dh = D // H
    scale = 1.0 / (Dh ** 0.5)

    # ---- attention branch ---------------------------------------------------
    xn = _layernorm(x, ln1g_ref[0], ln1b_ref[0])
    qkv = jnp.dot(xn.astype(jnp.bfloat16), wqkv_ref[0],
                  preferred_element_type=jnp.float32) + bqkv_ref[0]      # [L, 3D] f32
    q, k, v = qkv[:, :D], qkv[:, D:2 * D], qkv[:, 2 * D:]

    # causal mask generated in-kernel (VPU work, hidden under MXU)
    row = jax.lax.broadcasted_iota(jnp.int32, (L, L), 0)
    col = jax.lax.broadcasted_iota(jnp.int32, (L, L), 1)
    mask = jnp.where(row >= col, 0.0, NEG_INF)                           # [L, L] f32

    # TODO(synk): a fully head-batched [H,L,Dh] contraction needs a second-minor
    # relayout; kept as a small static head loop of plain 2-D MXU matmuls for
    # robust Mosaic lowering (per-head K=Dh underfill is inherent to MHA anyway).
    heads = []
    for h in range(H):
        qh = q[:, h * Dh:(h + 1) * Dh].astype(jnp.bfloat16)
        kh = k[:, h * Dh:(h + 1) * Dh].astype(jnp.bfloat16)
        vh = v[:, h * Dh:(h + 1) * Dh].astype(jnp.bfloat16)
        s = jax.lax.dot_general(qh, kh, (((1,), (1,)), ((), ())),
                                preferred_element_type=jnp.float32) * scale + mask
        s = s - jnp.max(s, axis=-1, keepdims=True)
        p = jnp.exp(s)
        p = p * pl.reciprocal(jnp.sum(p, axis=-1, keepdims=True), approx=True)
        heads.append(jnp.dot(p.astype(jnp.bfloat16), vh,
                             preferred_element_type=jnp.float32))
    attn = jnp.concatenate(heads, axis=-1)                               # [L, D] f32
    attn = jnp.dot(attn.astype(jnp.bfloat16), wo_ref[0],
                   preferred_element_type=jnp.float32) + bo_ref[0]
    x = x + attn

    # ---- MLP branch ----------------------------------------------------------
    xn2 = _layernorm(x, ln2g_ref[0], ln2b_ref[0])
    h1 = jnp.dot(xn2.astype(jnp.bfloat16), wfc_ref[0],
                 preferred_element_type=jnp.float32) + bfc_ref[0]        # [L, 4D]
    h1 = h1 * jax.nn.sigmoid(1.702 * h1)                                 # QuickGELU, f32
    mlp = jnp.dot(h1.astype(jnp.bfloat16), wpr_ref[0],
                  preferred_element_type=jnp.float32) + bpr_ref[0]       # [L, D]
    x_ref[0] = x + mlp


def final_kernel(x_ref, g_ref, b_ref, proj_ref, eot_ref, out_ref):
    # ln_final -> one-hot EOT gather -> bf16 projection (lane-dense padded output)
    x = x_ref[...]                                        # [B, L, D] f32
    B, L, D = x.shape
    xn = _layernorm(x, g_ref[...][None], b_ref[...][None])
    pos = jax.lax.broadcasted_iota(jnp.int32, (B, L), 1)
    onehot = (pos == eot_ref[...]).astype(jnp.float32)    # eot_ref: [B, 1] int32
    rows = jnp.sum(xn * onehot[:, :, None], axis=1)       # [B, D]
    out_ref[...] = jnp.dot(rows.astype(jnp.bfloat16), proj_ref[...],
                           preferred_element_type=jnp.float32)


# ----------------------------------------------------------------------------- wrappers
def _vmem_spec():
    return pl.BlockSpec(memory_space=pltpu.MemorySpace.VMEM)


def run_transformer(prompts, params, num_heads):
    B, L, D = prompts.shape
    n_layers = params["w_qkv"].shape[0]

    def layer_spec(shape):
        # stream layer l's slice of a stacked [n_layers, ...] parameter tensor
        return pl.BlockSpec((1,) + shape, lambda b, l: (l, 0, 0))

    return pl.pallas_call(
        functools.partial(transformer_kernel, num_heads=num_heads),
        out_shape=jax.ShapeDtypeStruct((B, L, D), jnp.float32),
        grid=(B, n_layers),
        in_specs=[
            pl.BlockSpec((1, L, D), lambda b, l: (b, 0, 0)),     # prompts
            pl.BlockSpec((L, D), lambda b, l: (0, 0)),           # positional embedding
            layer_spec((1, D)),                                  # ln1 gamma
            layer_spec((1, D)),                                  # ln1 beta
            layer_spec((D, 3 * D)),                              # W_qkv  (bf16)
            layer_spec((1, 3 * D)),                              # b_qkv
            layer_spec((D, D)),                                  # W_out  (bf16)
            layer_spec((1, D)),                                  # b_out
            layer_spec((1, D)),                                  # ln2 gamma
            layer_spec((1, D)),                                  # ln2 beta
            layer_spec((D, 4 * D)),                              # W_fc   (bf16)
            layer_spec((1, 4 * D)),                              # b_fc
            layer_spec((4 * D, D)),                              # W_proj (bf16)
            layer_spec((1, D)),                                  # b_proj
        ],
        # constant block index along the layer axis => activation stays in VMEM
        out_specs=pl.BlockSpec((1, L, D), lambda b, l: (b, 0, 0)),
        compiler_params=pltpu.CompilerParams(
            dimension_semantics=("parallel", "arbitrary")),
    )(prompts, params["pos"],
      params["ln1_g"], params["ln1_b"], params["w_qkv"], params["b_qkv"],
      params["w_out"], params["b_out"], params["ln2_g"], params["ln2_b"],
      params["w_fc"], params["b_fc"], params["w_proj"], params["b_proj"])


def final_proj(x, lnf_g, lnf_b, text_proj_pad, eot_idx):
    B = x.shape[0]
    Ppad = text_proj_pad.shape[1]
    return pl.pallas_call(
        final_kernel,
        out_shape=jax.ShapeDtypeStruct((B, Ppad), jnp.float32),
        in_specs=[_vmem_spec()] * 5,
        out_specs=_vmem_spec(),
    )(x, lnf_g, lnf_b, text_proj_pad, eot_idx)


def text_encoder_forward(prompts, tokenized_prompts, params, *, num_heads):
    x = run_transformer(prompts, params, num_heads)
    # glue: argmax over token ids locates the EOT position (pure index arithmetic)
    eot_idx = jnp.argmax(tokenized_prompts, axis=-1).astype(jnp.int32)[:, None]
    out_pad = final_proj(x, params["lnf_g"], params["lnf_b"],
                         params["text_proj_pad"], eot_idx)
    return out_pad[:, :params["proj_dim"]]


# ----------------------------------------------------------------------------- params
def init_params(key, L, D, n_layers, P):
    # TODO(synk): CLIP's self.dtype is often fp16; here MXU operands are bf16 and
    # LayerNorm / biases / softmax stay f32 (matches v5e guidance).
    keys = jax.random.split(key, 6)
    f32, bf16 = jnp.float32, jnp.bfloat16
    s = 1.0 / (D ** 0.5)
    Ppad = ((P + 127) // 128) * 128          # lane-dense output padding

    text_proj = s * jax.random.normal(keys[0], (D, P), f32)
    return {
        "pos": 0.01 * jax.random.normal(keys[1], (L, D), f32),
        "lnf_g": jnp.ones((1, D), f32),
        "lnf_b": jnp.zeros((1, D), f32),
        "text_proj_pad": jnp.pad(text_proj, ((0, 0), (0, Ppad - P))).astype(bf16),
        "proj_dim": P,
        # stacked per-layer parameters (leading axis = layer, streamed by BlockSpec)
        "ln1_g": jnp.ones((n_layers, 1, D), f32),
        "ln1_b": jnp.zeros((n_layers, 1, D), f32),
        "w_qkv": (s * jax.random.normal(keys[2], (n_layers, D, 3 * D), f32)).astype(bf16),
        "b_qkv": jnp.zeros((n_layers, 1, 3 * D), f32),
        "w_out": (s * jax.random.normal(keys[3], (n_layers, D, D), f32)).astype(bf16),
        "b_out": jnp.zeros((n_layers, 1, D), f32),
        "ln2_g": jnp.ones((n_layers, 1, D), f32),
        "ln2_b": jnp.zeros((n_layers, 1, D), f32),
        "w_fc": (s * jax.random.normal(keys[4], (n_layers, D, 4 * D), f32)).astype(bf16),
        "b_fc": jnp.zeros((n_layers, 1, 4 * D), f32),
        "w_proj": ((0.5 * s) * jax.random.normal(keys[5], (n_layers, 4 * D, D), f32)).astype(bf16),
        "b_proj": jnp.zeros((n_layers, 1, D), f32),
    }


# ----------------------------------------------------------------------------- main
if __name__ == "__main__":
    B, L, D, H, N_LAYERS, P = 2, 8, 32, 4, 2, 16

    key = jax.random.PRNGKey(0)
    k_params, k_prompts, k_tok = jax.random.split(key, 3)

    params = init_params(k_params, L, D, N_LAYERS, P)
    prompts = jax.random.normal(k_prompts, (B, L, D), jnp.float32)           # learned prompt embeddings
    tokenized_prompts = jax.random.randint(k_tok, (B, L), 0, 1000, dtype=jnp.int32)

    out = text_encoder_forward(prompts, tokenized_prompts, params, num_heads=H)
    out = jax.block_until_ready(out)
    assert out.shape == (B, P) and out.dtype == jnp.float32
    print("KERNEL_OK")
</pallas_src>

<mosaic_0001>
module attributes {stable_mosaic.version = 11 : i64} {
  func.func @transformer_kernel(%arg0: i32, %arg1: i32, %arg2: memref<1x8x32xf32, #tpu.memory_space<vmem>>, %arg3: memref<8x32xf32, #tpu.memory_space<vmem>>, %arg4: memref<1x1x32xf32, #tpu.memory_space<vmem>>, %arg5: memref<1x1x32xf32, #tpu.memory_space<vmem>>, %arg6: memref<1x32x96xbf16, #tpu.memory_space<vmem>>, %arg7: memref<1x1x96xf32, #tpu.memory_space<vmem>>, %arg8: memref<1x32x32xbf16, #tpu.memory_space<vmem>>, %arg9: memref<1x1x32xf32, #tpu.memory_space<vmem>>, %arg10: memref<1x1x32xf32, #tpu.memory_space<vmem>>, %arg11: memref<1x1x32xf32, #tpu.memory_space<vmem>>, %arg12: memref<1x32x128xbf16, #tpu.memory_space<vmem>>, %arg13: memref<1x1x128xf32, #tpu.memory_space<vmem>>, %arg14: memref<1x128x32xbf16, #tpu.memory_space<vmem>>, %arg15: memref<1x1x32xf32, #tpu.memory_space<vmem>>, %arg16: memref<1x8x32xf32, #tpu.memory_space<vmem>>) attributes {dimension_semantics = [#tpu.dimension_semantics<parallel>, #tpu.dimension_semantics<arbitrary>], iteration_bounds = array<i64: 2, 2>, scalar_prefetch = 0 : i64, scratch_operands = 0 : i64, tpu.core_type = #tpu.core_type<tc>, window_params = [{transform_indices = @transform_0, window_bounds = array<i64: 1, 8, 32>}, {pipeline_mode = #tpu.pipeline_mode<synchronous>, transform_indices = @transform_1, window_bounds = array<i64: 8, 32>}, {transform_indices = @transform_2, window_bounds = array<i64: 1, 1, 32>}, {transform_indices = @transform_3, window_bounds = array<i64: 1, 1, 32>}, {transform_indices = @transform_4, window_bounds = array<i64: 1, 32, 96>}, {transform_indices = @transform_5, window_bounds = array<i64: 1, 1, 96>}, {transform_indices = @transform_6, window_bounds = array<i64: 1, 32, 32>}, {transform_indices = @transform_7, window_bounds = array<i64: 1, 1, 32>}, {transform_indices = @transform_8, window_bounds = array<i64: 1, 1, 32>}, {transform_indices = @transform_9, window_bounds = array<i64: 1, 1, 32>}, {transform_indices = @transform_10, window_bounds = array<i64: 1, 32, 128>}, {transform_indices = @transform_11, window_bounds = array<i64: 1, 1, 128>}, {transform_indices = @transform_12, window_bounds = array<i64: 1, 128, 32>}, {transform_indices = @transform_13, window_bounds = array<i64: 1, 1, 32>}, {transform_indices = @transform_14, window_bounds = array<i64: 1, 8, 32>}]} {
    %c0_i32 = arith.constant 0 : i32
    %0 = arith.cmpi eq, %arg1, %c0_i32 : i32
    %1 = arith.extui %0 : i1 to i32
    %c0_i32_0 = arith.constant 0 : i32
    %2 = arith.cmpi ne, %1, %c0_i32_0 : i32
    scf.if %2 {
      %c0_79 = arith.constant 0 : index
      %c0_80 = arith.constant 0 : index
      %c0_81 = arith.constant 0 : index
      %200 = vector.load %arg2[%c0_79, %c0_80, %c0_81] : memref<1x8x32xf32, #tpu.memory_space<vmem>>, vector<1x8x32xf32>
      %c0_82 = arith.constant 0 : index
      %c0_83 = arith.constant 0 : index
      %201 = vector.load %arg3[%c0_82, %c0_83] : memref<8x32xf32, #tpu.memory_space<vmem>>, vector<8x32xf32>
      %202 = vector.shape_cast %201 : vector<8x32xf32> to vector<1x8x32xf32>
      %203 = arith.addf %200, %202 : vector<1x8x32xf32>
      %c0_84 = arith.constant 0 : index
      %c0_85 = arith.constant 0 : index
      %c0_86 = arith.constant 0 : index
      %204 = vector.load %arg16[%c0_84, %c0_85, %c0_86] : memref<1x8x32xf32, #tpu.memory_space<vmem>>, vector<1x8x32xf32>
      tpu.vector_store %arg16[%c0_84, %c0_85, %c0_86], %203 {strides = array<i32>} : memref<1x8x32xf32, #tpu.memory_space<vmem>>, vector<1x8x32xf32>,
    } else {
    }
    %c0 = arith.constant 0 : index
    %c0_1 = arith.constant 0 : index
    %c0_2 = arith.constant 0 : index
    %3 = vector.load %arg16[%c0, %c0_1, %c0_2] : memref<1x8x32xf32, #tpu.memory_space<vmem>>, vector<1x8x32xf32>
    %4 = vector.shape_cast %3 : vector<1x8x32xf32> to vector<8x32xf32>
    %c0_3 = arith.constant 0 : index
    %c0_4 = arith.constant 0 : index
    %c0_5 = arith.constant 0 : index
    %5 = vector.load %arg4[%c0_3, %c0_4, %c0_5] : memref<1x1x32xf32, #tpu.memory_space<vmem>>, vector<1x1x32xf32>
    %6 = vector.shape_cast %5 : vector<1x1x32xf32> to vector<1x32xf32>
    %c0_6 = arith.constant 0 : index
    %c0_7 = arith.constant 0 : index
    %c0_8 = arith.constant 0 : index
    %7 = vector.load %arg5[%c0_6, %c0_7, %c0_8] : memref<1x1x32xf32, #tpu.memory_space<vmem>>, vector<1x1x32xf32>
    %8 = vector.shape_cast %7 : vector<1x1x32xf32> to vector<1x32xf32>
    %cst = arith.constant dense<0.000000e+00> : vector<8xf32>
    %9 = vector.multi_reduction <add>, %4, %cst [1] : vector<8x32xf32> to vector<8xf32>
    %10 = vector.shape_cast %9 : vector<8xf32> to vector<8x1xf32>
    %cst_9 = arith.constant 3.200000e+01 : f32
    %11 = vector.broadcast %cst_9 : f32 to vector<8x1xf32>
    %12 = arith.divf %10, %11 : vector<8x1xf32>
    %13 = vector.broadcast %12 : vector<8x1xf32> to vector<8x32xf32>
    %14 = arith.subf %4, %13 : vector<8x32xf32>
    %15 = arith.mulf %14, %14 : vector<8x32xf32>
    %cst_10 = arith.constant dense<0.000000e+00> : vector<8xf32>
    %16 = vector.multi_reduction <add>, %15, %cst_10 [1] : vector<8x32xf32> to vector<8xf32>
    %17 = vector.shape_cast %16 : vector<8xf32> to vector<8x1xf32>
    %cst_11 = arith.constant 3.200000e+01 : f32
    %18 = vector.broadcast %cst_11 : f32 to vector<8x1xf32>
    %19 = arith.divf %17, %18 : vector<8x1xf32>
    %20 = vector.broadcast %12 : vector<8x1xf32> to vector<8x32xf32>
    %21 = arith.subf %4, %20 : vector<8x32xf32>
    %cst_12 = arith.constant 9.99999974E-6 : f32
    %22 = vector.broadcast %cst_12 : f32 to vector<8x1xf32>
    %23 = arith.addf %19, %22 : vector<8x1xf32>
    %24 = math.rsqrt %23 : vector<8x1xf32>
    %25 = vector.broadcast %24 : vector<8x1xf32> to vector<8x32xf32>
    %26 = arith.mulf %21, %25 : vector<8x32xf32>
    %27 = vector.broadcast %6 : vector<1x32xf32> to vector<8x32xf32>
    %28 = arith.mulf %26, %27 : vector<8x32xf32>
    %29 = vector.broadcast %8 : vector<1x32xf32> to vector<8x32xf32>
    %30 = arith.addf %28, %29 : vector<8x32xf32>
    %31 = arith.truncf %30 : vector<8x32xf32> to vector<8x32xbf16>
    %c0_13 = arith.constant 0 : index
    %c0_14 = arith.constant 0 : index
    %c0_15 = arith.constant 0 : index
    %32 = vector.load %arg6[%c0_13, %c0_14, %c0_15] : memref<1x32x96xbf16, #tpu.memory_space<vmem>>, vector<1x32x96xbf16>
    %33 = vector.shape_cast %32 : vector<1x32x96xbf16> to vector<32x96xbf16>
    %cst_16 = arith.constant dense<0.000000e+00> : vector<8x96xf32>
    %34 = tpu.matmul %31, %33, %cst_16 {dimension_numbers = #tpu.dot_dimension_numbers<[1], [0], [0], [1], [0, 0, 1, 1], [], []>} : vector<8x32xbf16>, vector<32x96xbf16>, vector<8x96xf32> -> vector<8x96xf32>
    %c0_17 = arith.constant 0 : index
    %c0_18 = arith.constant 0 : index
    %c0_19 = arith.constant 0 : index
    %35 = vector.load %arg7[%c0_17, %c0_18, %c0_19] : memref<1x1x96xf32, #tpu.memory_space<vmem>>, vector<1x1x96xf32>
    %36 = vector.shape_cast %35 : vector<1x1x96xf32> to vector<1x96xf32>
    %37 = vector.broadcast %36 : vector<1x96xf32> to vector<8x96xf32>
    %38 = arith.addf %34, %37 : vector<8x96xf32>
    %39 = vector.extract_strided_slice %38 {offsets = [0, 0], sizes = [8, 32], strides = [1, 1]} : vector<8x96xf32> to vector<8x32xf32>
    %40 = vector.extract_strided_slice %38 {offsets = [0, 32], sizes = [8, 32], strides = [1, 1]} : vector<8x96xf32> to vector<8x32xf32>
    %41 = vector.extract_strided_slice %38 {offsets = [0, 64], sizes = [8, 32], strides = [1, 1]} : vector<8x96xf32> to vector<8x32xf32>
    %42 = tpu.iota {dimensions = array<i32: 0>} : vector<8x8xi32>
    %43 = tpu.iota {dimensions = array<i32: 1>} : vector<8x8xi32>
    %44 = arith.cmpi sge, %42, %43 : vector<8x8xi32>
    %cst_20 = arith.constant 0.000000e+00 : f32
    %cst_21 = arith.constant -1.000000e+09 : f32
    %45 = vector.broadcast %cst_20 : f32 to vector<8x8xf32>
    %46 = vector.broadcast %cst_21 : f32 to vector<8x8xf32>
    %47 = arith.select %44, %45, %46 : vector<8x8xi1>, vector<8x8xf32>
    %48 = vector.extract_strided_slice %39 {offsets = [0, 0], sizes = [8, 8], strides = [1, 1]} : vector<8x32xf32> to vector<8x8xf32>
    %49 = arith.truncf %48 : vector<8x8xf32> to vector<8x8xbf16>
    %50 = vector.extract_strided_slice %40 {offsets = [0, 0], sizes = [8, 8], strides = [1, 1]} : vector<8x32xf32> to vector<8x8xf32>
    %51 = arith.truncf %50 : vector<8x8xf32> to vector<8x8xbf16>
    %52 = vector.extract_strided_slice %41 {offsets = [0, 0], sizes = [8, 8], strides = [1, 1]} : vector<8x32xf32> to vector<8x8xf32>
    %53 = arith.truncf %52 : vector<8x8xf32> to vector<8x8xbf16>
    %cst_22 = arith.constant dense<0.000000e+00> : vector<8x8xf32>
    %54 = tpu.matmul %49, %51, %cst_22 {dimension_numbers = #tpu.dot_dimension_numbers<[1], [1], [0], [0], [0, 0, 1, 0], [], []>} : vector<8x8xbf16>, vector<8x8xbf16>, vector<8x8xf32> -> vector<8x8xf32>
    %cst_23 = arith.constant 0.353553385 : f32
    %55 = vector.broadcast %cst_23 : f32 to vector<8x8xf32>
    %56 = arith.mulf %54, %55 : vector<8x8xf32>
    %57 = arith.addf %56, %47 : vector<8x8xf32>
    %cst_24 = arith.constant dense<0xFF800000> : vector<8xf32>
    %58 = vector.multi_reduction <maximumf>, %57, %cst_24 [1] : vector<8x8xf32> to vector<8xf32>
    %59 = vector.shape_cast %58 : vector<8xf32> to vector<8x1xf32>
    %60 = vector.broadcast %59 : vector<8x1xf32> to vector<8x8xf32>
    %61 = arith.subf %57, %60 : vector<8x8xf32>
    %62 = math.exp %61 : vector<8x8xf32>
    %cst_25 = arith.constant dense<0.000000e+00> : vector<8xf32>
    %63 = vector.multi_reduction <add>, %62, %cst_25 [1] : vector<8x8xf32> to vector<8xf32>
    %64 = vector.shape_cast %63 : vector<8xf32> to vector<8x1xf32>
    %65 = tpu.reciprocal %64 {approx = true} : vector<8x1xf32> -> vector<8x1xf32>
    %66 = vector.broadcast %65 : vector<8x1xf32> to vector<8x8xf32>
    %67 = arith.mulf %62, %66 : vector<8x8xf32>
    %68 = arith.truncf %67 : vector<8x8xf32> to vector<8x8xbf16>
    %cst_26 = arith.constant dense<0.000000e+00> : vector<8x8xf32>
    %69 = tpu.matmul %68, %53, %cst_26 {dimension_numbers = #tpu.dot_dimension_numbers<[1], [0], [0], [1], [0, 0, 1, 1], [], []>} : vector<8x8xbf16>, vector<8x8xbf16>, vector<8x8xf32> -> vector<8x8xf32>
    %70 = vector.extract_strided_slice %39 {offsets = [0, 8], sizes = [8, 8], strides = [1, 1]} : vector<8x32xf32> to vector<8x8xf32>
    %71 = arith.truncf %70 : vector<8x8xf32> to vector<8x8xbf16>
    %72 = vector.extract_strided_slice %40 {offsets = [0, 8], sizes = [8, 8], strides = [1, 1]} : vector<8x32xf32> to vector<8x8xf32>
    %73 = arith.truncf %72 : vector<8x8xf32> to vector<8x8xbf16>
    %74 = vector.extract_strided_slice %41 {offsets = [0, 8], sizes = [8, 8], strides = [1, 1]} : vector<8x32xf32> to vector<8x8xf32>
    %75 = arith.truncf %74 : vector<8x8xf32> to vector<8x8xbf16>
    %cst_27 = arith.constant dense<0.000000e+00> : vector<8x8xf32>
    %76 = tpu.matmul %71, %73, %cst_27 {dimension_numbers = #tpu.dot_dimension_numbers<[1], [1], [0], [0], [0, 0, 1, 0], [], []>} : vector<8x8xbf16>, vector<8x8xbf16>, vector<8x8xf32> -> vector<8x8xf32>
    %cst_28 = arith.constant 0.353553385 : f32
    %77 = vector.broadcast %cst_28 : f32 to vector<8x8xf32>
    %78 = arith.mulf %76, %77 : vector<8x8xf32>
    %79 = arith.addf %78, %47 : vector<8x8xf32>
    %cst_29 = arith.constant dense<0xFF800000> : vector<8xf32>
    %80 = vector.multi_reduction <maximumf>, %79, %cst_29 [1] : vector<8x8xf32> to vector<8xf32>
    %81 = vector.shape_cast %80 : vector<8xf32> to vector<8x1xf32>
    %82 = vector.broadcast %81 : vector<8x1xf32> to vector<8x8xf32>
    %83 = arith.subf %79, %82 : vector<8x8xf32>
    %84 = math.exp %83 : vector<8x8xf32>
    %cst_30 = arith.constant dense<0.000000e+00> : vector<8xf32>
    %85 = vector.multi_reduction <add>, %84, %cst_30 [1] : vector<8x8xf32> to vector<8xf32>
    %86 = vector.shape_cast %85 : vector<8xf32> to vector<8x1xf32>
    %87 = tpu.reciprocal %86 {approx = true} : vector<8x1xf32> -> vector<8x1xf32>
    %88 = vector.broadcast %87 : vector<8x1xf32> to vector<8x8xf32>
    %89 = arith.mulf %84, %88 : vector<8x8xf32>
    %90 = arith.truncf %89 : vector<8x8xf32> to vector<8x8xbf16>
    %cst_31 = arith.constant dense<0.000000e+00> : vector<8x8xf32>
    %91 = tpu.matmul %90, %75, %cst_31 {dimension_numbers = #tpu.dot_dimension_numbers<[1], [0], [0], [1], [0, 0, 1, 1], [], []>} : vector<8x8xbf16>, vector<8x8xbf16>, vector<8x8xf32> -> vector<8x8xf32>
    %92 = vector.extract_strided_slice %39 {offsets = [0, 16], sizes = [8, 8], strides = [1, 1]} : vector<8x32xf32> to vector<8x8xf32>
    %93 = arith.truncf %92 : vector<8x8xf32> to vector<8x8xbf16>
    %94 = vector.extract_strided_slice %40 {offsets = [0, 16], sizes = [8, 8], strides = [1, 1]} : vector<8x32xf32> to vector<8x8xf32>
    %95 = arith.truncf %94 : vector<8x8xf32> to vector<8x8xbf16>
    %96 = vector.extract_strided_slice %41 {offsets = [0, 16], sizes = [8, 8], strides = [1, 1]} : vector<8x32xf32> to vector<8x8xf32>
    %97 = arith.truncf %96 : vector<8x8xf32> to vector<8x8xbf16>
    %cst_32 = arith.constant dense<0.000000e+00> : vector<8x8xf32>
    %98 = tpu.matmul %93, %95, %cst_32 {dimension_numbers = #tpu.dot_dimension_numbers<[1], [1], [0], [0], [0, 0, 1, 0], [], []>} : vector<8x8xbf16>, vector<8x8xbf16>, vector<8x8xf32> -> vector<8x8xf32>
    %cst_33 = arith.constant 0.353553385 : f32
    %99 = vector.broadcast %cst_33 : f32 to vector<8x8xf32>
    %100 = arith.mulf %98, %99 : vector<8x8xf32>
    %101 = arith.addf %100, %47 : vector<8x8xf32>
    %cst_34 = arith.constant dense<0xFF800000> : vector<8xf32>
    %102 = vector.multi_reduction <maximumf>, %101, %cst_34 [1] : vector<8x8xf32> to vector<8xf32>
    %103 = vector.shape_cast %102 : vector<8xf32> to vector<8x1xf32>
    %104 = vector.broadcast %103 : vector<8x1xf32> to vector<8x8xf32>
    %105 = arith.subf %101, %104 : vector<8x8xf32>
    %106 = math.exp %105 : vector<8x8xf32>
    %cst_35 = arith.constant dense<0.000000e+00> : vector<8xf32>
    %107 = vector.multi_reduction <add>, %106, %cst_35 [1] : vector<8x8xf32> to vector<8xf32>
    %108 = vector.shape_cast %107 : vector<8xf32> to vector<8x1xf32>
    %109 = tpu.reciprocal %108 {approx = true} : vector<8x1xf32> -> vector<8x1xf32>
    %110 = vector.broadcast %109 : vector<8x1xf32> to vector<8x8xf32>
    %111 = arith.mulf %106, %110 : vector<8x8xf32>
    %112 = arith.truncf %111 : vector<8x8xf32> to vector<8x8xbf16>
    %cst_36 = arith.constant dense<0.000000e+00> : vector<8x8xf32>
    %113 = tpu.matmul %112, %97, %cst_36 {dimension_numbers = #tpu.dot_dimension_numbers<[1], [0], [0], [1], [0, 0, 1, 1], [], []>} : vector<8x8xbf16>, vector<8x8xbf16>, vector<8x8xf32> -> vector<8x8xf32>
    %114 = vector.extract_strided_slice %39 {offsets = [0, 24], sizes = [8, 8], strides = [1, 1]} : vector<8x32xf32> to vector<8x8xf32>
    %115 = arith.truncf %114 : vector<8x8xf32> to vector<8x8xbf16>
    %116 = vector.extract_strided_slice %40 {offsets = [0, 24], sizes = [8, 8], strides = [1, 1]} : vector<8x32xf32> to vector<8x8xf32>
    %117 = arith.truncf %116 : vector<8x8xf32> to vector<8x8xbf16>
    %118 = vector.extract_strided_slice %41 {offsets = [0, 24], sizes = [8, 8], strides = [1, 1]} : vector<8x32xf32> to vector<8x8xf32>
    %119 = arith.truncf %118 : vector<8x8xf32> to vector<8x8xbf16>
    %cst_37 = arith.constant dense<0.000000e+00> : vector<8x8xf32>
    %120 = tpu.matmul %115, %117, %cst_37 {dimension_numbers = #tpu.dot_dimension_numbers<[1], [1], [0], [0], [0, 0, 1, 0], [], []>} : vector<8x8xbf16>, vector<8x8xbf16>, vector<8x8xf32> -> vector<8x8xf32>
    %cst_38 = arith.constant 0.353553385 : f32
    %121 = vector.broadcast %cst_38 : f32 to vector<8x8xf32>
    %122 = arith.mulf %120, %121 : vector<8x8xf32>
    %123 = arith.addf %122, %47 : vector<8x8xf32>
    %cst_39 = arith.constant dense<0xFF800000> : vector<8xf32>
    %124 = vector.multi_reduction <maximumf>, %123, %cst_39 [1] : vector<8x8xf32> to vector<8xf32>
    %125 = vector.shape_cast %124 : vector<8xf32> to vector<8x1xf32>
    %126 = vector.broadcast %125 : vector<8x1xf32> to vector<8x8xf32>
    %127 = arith.subf %123, %126 : vector<8x8xf32>
    %128 = math.exp %127 : vector<8x8xf32>
    %cst_40 = arith.constant dense<0.000000e+00> : vector<8xf32>
    %129 = vector.multi_reduction <add>, %128, %cst_40 [1] : vector<8x8xf32> to vector<8xf32>
    %130 = vector.shape_cast %129 : vector<8xf32> to vector<8x1xf32>
    %131 = tpu.reciprocal %130 {approx = true} : vector<8x1xf32> -> vector<8x1xf32>
    %132 = vector.broadcast %131 : vector<8x1xf32> to vector<8x8xf32>
    %133 = arith.mulf %128, %132 : vector<8x8xf32>
    %134 = arith.truncf %133 : vector<8x8xf32> to vector<8x8xbf16>
    %cst_41 = arith.constant dense<0.000000e+00> : vector<8x8xf32>
    %135 = tpu.matmul %134, %119, %cst_41 {dimension_numbers = #tpu.dot_dimension_numbers<[1], [0], [0], [1], [0, 0, 1, 1], [], []>} : vector<8x8xbf16>, vector<8x8xbf16>, vector<8x8xf32> -> vector<8x8xf32>
    %136 = tpu.concatenate %69, %91, %113, %135 in 1 : vector<8x8xf32>, vector<8x8xf32>, vector<8x8xf32>, vector<8x8xf32> -> vector<8x32xf32>
    %137 = arith.truncf %136 : vector<8x32xf32> to vector<8x32xbf16>
    %c0_42 = arith.constant 0 : index
    %c0_43 = arith.constant 0 : index
    %c0_44 = arith.constant 0 : index
    %138 = vector.load %arg8[%c0_42, %c0_43, %c0_44] : memref<1x32x32xbf16, #tpu.memory_space<vmem>>, vector<1x32x32xbf16>
    %139 = vector.shape_cast %138 : vector<1x32x32xbf16> to vector<32x32xbf16>
    %cst_45 = arith.constant dense<0.000000e+00> : vector<8x32xf32>
    %140 = tpu.matmul %137, %139, %cst_45 {dimension_numbers = #tpu.dot_dimension_numbers<[1], [0], [0], [1], [0, 0, 1, 1], [], []>} : vector<8x32xbf16>, vector<32x32xbf16>, vector<8x32xf32> -> vector<8x32xf32>
    %c0_46 = arith.constant 0 : index
    %c0_47 = arith.constant 0 : index
    %c0_48 = arith.constant 0 : index
    %141 = vector.load %arg9[%c0_46, %c0_47, %c0_48] : memref<1x1x32xf32, #tpu.memory_space<vmem>>, vector<1x1x32xf32>
    %142 = vector.shape_cast %141 : vector<1x1x32xf32> to vector<1x32xf32>
    %143 = vector.broadcast %142 : vector<1x32xf32> to vector<8x32xf32>
    %144 = arith.addf %140, %143 : vector<8x32xf32>
    %145 = arith.addf %4, %144 : vector<8x32xf32>
    %c0_49 = arith.constant 0 : index
    %c0_50 = arith.constant 0 : index
    %c0_51 = arith.constant 0 : index
    %146 = vector.load %arg10[%c0_49, %c0_50, %c0_51] : memref<1x1x32xf32, #tpu.memory_space<vmem>>, vector<1x1x32xf32>
    %147 = vector.shape_cast %146 : vector<1x1x32xf32> to vector<1x32xf32>
    %c0_52 = arith.constant 0 : index
    %c0_53 = arith.constant 0 : index
    %c0_54 = arith.constant 0 : index
    %148 = vector.load %arg11[%c0_52, %c0_53, %c0_54] : memref<1x1x32xf32, #tpu.memory_space<vmem>>, vector<1x1x32xf32>
    %149 = vector.shape_cast %148 : vector<1x1x32xf32> to vector<1x32xf32>
    %cst_55 = arith.constant dense<0.000000e+00> : vector<8xf32>
    %150 = vector.multi_reduction <add>, %145, %cst_55 [1] : vector<8x32xf32> to vector<8xf32>
    %151 = vector.shape_cast %150 : vector<8xf32> to vector<8x1xf32>
    %cst_56 = arith.constant 3.200000e+01 : f32
    %152 = vector.broadcast %cst_56 : f32 to vector<8x1xf32>
    %153 = arith.divf %151, %152 : vector<8x1xf32>
    %154 = vector.broadcast %153 : vector<8x1xf32> to vector<8x32xf32>
    %155 = arith.subf %145, %154 : vector<8x32xf32>
    %156 = arith.mulf %155, %155 : vector<8x32xf32>
    %cst_57 = arith.constant dense<0.000000e+00> : vector<8xf32>
    %157 = vector.multi_reduction <add>, %156, %cst_57 [1] : vector<8x32xf32> to vector<8xf32>
    %158 = vector.shape_cast %157 : vector<8xf32> to vector<8x1xf32>
    %cst_58 = arith.constant 3.200000e+01 : f32
    %159 = vector.broadcast %cst_58 : f32 to vector<8x1xf32>
    %160 = arith.divf %158, %159 : vector<8x1xf32>
    %161 = vector.broadcast %153 : vector<8x1xf32> to vector<8x32xf32>
    %162 = arith.subf %145, %161 : vector<8x32xf32>
    %cst_59 = arith.constant 9.99999974E-6 : f32
    %163 = vector.broadcast %cst_59 : f32 to vector<8x1xf32>
    %164 = arith.addf %160, %163 : vector<8x1xf32>
    %165 = math.rsqrt %164 : vector<8x1xf32>
    %166 = vector.broadcast %165 : vector<8x1xf32> to vector<8x32xf32>
    %167 = arith.mulf %162, %166 : vector<8x32xf32>
    %168 = vector.broadcast %147 : vector<1x32xf32> to vector<8x32xf32>
    %169 = arith.mulf %167, %168 : vector<8x32xf32>
    %170 = vector.broadcast %149 : vector<1x32xf32> to vector<8x32xf32>
    %171 = arith.addf %169, %170 : vector<8x32xf32>
    %172 = arith.truncf %171 : vector<8x32xf32> to vector<8x32xbf16>
    %c0_60 = arith.constant 0 : index
    %c0_61 = arith.constant 0 : index
    %c0_62 = arith.constant 0 : index
    %173 = vector.load %arg12[%c0_60, %c0_61, %c0_62] : memref<1x32x128xbf16, #tpu.memory_space<vmem>>, vector<1x32x128xbf16>
    %174 = vector.shape_cast %173 : vector<1x32x128xbf16> to vector<32x128xbf16>
    %cst_63 = arith.constant dense<0.000000e+00> : vector<8x128xf32>
    %175 = tpu.matmul %172, %174, %cst_63 {dimension_numbers = #tpu.dot_dimension_numbers<[1], [0], [0], [1], [0, 0, 1, 1], [], []>} : vector<8x32xbf16>, vector<32x128xbf16>, vector<8x128xf32> -> vector<8x128xf32>
    %c0_64 = arith.constant 0 : index
    %c0_65 = arith.constant 0 : index
    %c0_66 = arith.constant 0 : index
    %176 = vector.load %arg13[%c0_64, %c0_65, %c0_66] : memref<1x1x128xf32, #tpu.memory_space<vmem>>, vector<1x1x128xf32>
    %177 = vector.shape_cast %176 : vector<1x1x128xf32> to vector<1x128xf32>
    %178 = vector.broadcast %177 : vector<1x128xf32> to vector<8x128xf32>
    %179 = arith.addf %175, %178 : vector<8x128xf32>
    %cst_67 = arith.constant 1.702000e+00 : f32
    %180 = vector.broadcast %cst_67 : f32 to vector<8x128xf32>
    %181 = arith.mulf %180, %179 : vector<8x128xf32>
    %182 = arith.negf %181 : vector<8x128xf32>
    %183 = math.exp %182 : vector<8x128xf32>
    %cst_68 = arith.constant 1.000000e+00 : f32
    %184 = vector.broadcast %cst_68 : f32 to vector<8x128xf32>
    %185 = arith.addf %184, %183 : vector<8x128xf32>
    %186 = arith.divf %184, %185 : vector<8x128xf32>
    %187 = arith.mulf %179, %186 : vector<8x128xf32>
    %188 = arith.truncf %187 : vector<8x128xf32> to vector<8x128xbf16>
    %c0_69 = arith.constant 0 : index
    %c0_70 = arith.constant 0 : index
    %c0_71 = arith.constant 0 : index
    %189 = vector.load %arg14[%c0_69, %c0_70, %c0_71] : memref<1x128x32xbf16, #tpu.memory_space<vmem>>, vector<1x128x32xbf16>
    %190 = vector.shape_cast %189 : vector<1x128x32xbf16> to vector<128x32xbf16>
    %cst_72 = arith.constant dense<0.000000e+00> : vector<8x32xf32>
    %191 = tpu.matmul %188, %190, %cst_72 {dimension_numbers = #tpu.dot_dimension_numbers<[1], [0], [0], [1], [0, 0, 1, 1], [], []>} : vector<8x128xbf16>, vector<128x32xbf16>, vector<8x32xf32> -> vector<8x32xf32>
    %c0_73 = arith.constant 0 : index
    %c0_74 = arith.constant 0 : index
    %c0_75 = arith.constant 0 : index
    %192 = vector.load %arg15[%c0_73, %c0_74, %c0_75] : memref<1x1x32xf32, #tpu.memory_space<vmem>>, vector<1x1x32xf32>
    %193 = vector.shape_cast %192 : vector<1x1x32xf32> to vector<1x32xf32>
    %194 = vector.broadcast %193 : vector<1x32xf32> to vector<8x32xf32>
    %195 = arith.addf %191, %194 : vector<8x32xf32>
    %196 = arith.addf %145, %195 : vector<8x32xf32>
    %c0_76 = arith.constant 0 : index
    %c0_77 = arith.constant 0 : index
    %c0_78 = arith.constant 0 : index
    %197 = vector.load %arg16[%c0_76, %c0_77, %c0_78] : memref<1x8x32xf32, #tpu.memory_space<vmem>>, vector<1x8x32xf32>
    %198 = vector.shape_cast %197 : vector<1x8x32xf32> to vector<8x32xf32>
    %199 = vector.shape_cast %196 : vector<8x32xf32> to vector<1x8x32xf32>
    tpu.vector_store %arg16[%c0_76, %c0_77, %c0_78], %199 {strides = array<i32>} : memref<1x8x32xf32, #tpu.memory_space<vmem>>, vector<1x8x32xf32>,
    return
  }
  func.func @transform_0(%arg0: i32, %arg1: i32) -> (i32, i32, i32) {
    %c0_i32 = arith.constant 0 : i32
    %c0_i32_0 = arith.constant 0 : i32
    %c0_i32_1 = arith.constant 0 : i32
    return %arg0, %c0_i32, %c0_i32_0 : i32, i32, i32
  }
  func.func @transform_1(%arg0: i32, %arg1: i32) -> (i32, i32) {
    %c0_i32 = arith.constant 0 : i32
    %c0_i32_0 = arith.constant 0 : i32
    %c0_i32_1 = arith.constant 0 : i32
    return %c0_i32, %c0_i32_0 : i32, i32
  }
  func.func @transform_2(%arg0: i32, %arg1: i32) -> (i32, i32, i32) {
    %c0_i32 = arith.constant 0 : i32
    %c0_i32_0 = arith.constant 0 : i32
    %c0_i32_1 = arith.constant 0 : i32
    return %arg1, %c0_i32, %c0_i32_0 : i32, i32, i32
  }
  func.func @transform_3(%arg0: i32, %arg1: i32) -> (i32, i32, i32) {
    %c0_i32 = arith.constant 0 : i32
    %c0_i32_0 = arith.constant 0 : i32
    %c0_i32_1 = arith.constant 0 : i32
    return %arg1, %c0_i32, %c0_i32_0 : i32, i32, i32
  }
  func.func @transform_4(%arg0: i32, %arg1: i32) -> (i32, i32, i32) {
    %c0_i32 = arith.constant 0 : i32
    %c0_i32_0 = arith.constant 0 : i32
    %c0_i32_1 = arith.constant 0 : i32
    return %arg1, %c0_i32, %c0_i32_0 : i32, i32, i32
  }
  func.func @transform_5(%arg0: i32, %arg1: i32) -> (i32, i32, i32) {
    %c0_i32 = arith.constant 0 : i32
    %c0_i32_0 = arith.constant 0 : i32
    %c0_i32_1 = arith.constant 0 : i32
    return %arg1, %c0_i32, %c0_i32_0 : i32, i32, i32
  }
  func.func @transform_6(%arg0: i32, %arg1: i32) -> (i32, i32, i32) {
    %c0_i32 = arith.constant 0 : i32
    %c0_i32_0 = arith.constant 0 : i32
    %c0_i32_1 = arith.constant 0 : i32
    return %arg1, %c0_i32, %c0_i32_0 : i32, i32, i32
  }
  func.func @transform_7(%arg0: i32, %arg1: i32) -> (i32, i32, i32) {
    %c0_i32 = arith.constant 0 : i32
    %c0_i32_0 = arith.constant 0 : i32
    %c0_i32_1 = arith.constant 0 : i32
    return %arg1, %c0_i32, %c0_i32_0 : i32, i32, i32
  }
  func.func @transform_8(%arg0: i32, %arg1: i32) -> (i32, i32, i32) {
    %c0_i32 = arith.constant 0 : i32
    %c0_i32_0 = arith.constant 0 : i32
    %c0_i32_1 = arith.constant 0 : i32
    return %arg1, %c0_i32, %c0_i32_0 : i32, i32, i32
  }
  func.func @transform_9(%arg0: i32, %arg1: i32) -> (i32, i32, i32) {
    %c0_i32 = arith.constant 0 : i32
    %c0_i32_0 = arith.constant 0 : i32
    %c0_i32_1 = arith.constant 0 : i32
    return %arg1, %c0_i32, %c0_i32_0 : i32, i32, i32
  }
  func.func @transform_10(%arg0: i32, %arg1: i32) -> (i32, i32, i32) {
    %c0_i32 = arith.constant 0 : i32
    %c0_i32_0 = arith.constant 0 : i32
    %c0_i32_1 = arith.constant 0 : i32
    return %arg1, %c0_i32, %c0_i32_0 : i32, i32, i32
  }
  func.func @transform_11(%arg0: i32, %arg1: i32) -> (i32, i32, i32) {
    %c0_i32 = arith.constant 0 : i32
    %c0_i32_0 = arith.constant 0 : i32
    %c0_i32_1 = arith.constant 0 : i32
    return %arg1, %c0_i32, %c0_i32_0 : i32, i32, i32
  }
  func.func @transform_12(%arg0: i32, %arg1: i32) -> (i32, i32, i32) {
    %c0_i32 = arith.constant 0 : i32
    %c0_i32_0 = arith.constant 0 : i32
    %c0_i32_1 = arith.constant 0 : i32
    return %arg1, %c0_i32, %c0_i32_0 : i32, i32, i32
  }
  func.func @transform_13(%arg0: i32, %arg1: i32) -> (i32, i32, i32) {
    %c0_i32 = arith.constant 0 : i32
    %c0_i32_0 = arith.constant 0 : i32
    %c0_i32_1 = arith.constant 0 : i32
    return %arg1, %c0_i32, %c0_i32_0 : i32, i32, i32
  }
  func.func @transform_14(%arg0: i32, %arg1: i32) -> (i32, i32, i32) {
    %c0_i32 = arith.constant 0 : i32
    %c0_i32_0 = arith.constant 0 : i32
    %c0_i32_1 = arith.constant 0 : i32
    return %arg0, %c0_i32, %c0_i32_0 : i32, i32, i32
  }
}

</mosaic_0001>

<bundles_post_ra>
// kernel: tpu_custom_call.1
= control target key start
LH: loop header
LB: loop body
LE: loop exit
PB: predicated region body
PF: predicated region fallthrough
CT: control target
= control target key end

     0   :  { %s2153_s0 = inlined_call_operand.vmem [shape: f32[2,8,32], index: 0, kind: input, shape index: {}]   ;;  %s2154_s1 = inlined_call_operand.vmem [shape: f32[8,32], index: 1, kind: input, shape index: {}]   ;;  %s2155_s2 = inlined_call_operand.vmem [shape: f32[2,1,32], index: 2, kind: input, shape index: {}]   ;;  %s2156_s3 = inlined_call_operand.vmem [shape: f32[2,1,32], index: 3, kind: input, shape index: {}]   ;;  %s2157_s4 = inlined_call_operand.vmem [shape: bf16[2,32,96], index: 4, kind: input, shape index: {}]   ;;  %s2158_s5 = inlined_call_operand.vmem [shape: f32[2,1,96], index: 5, kind: input, shape index: {}]   ;;  %s2159_s6 = inlined_call_operand.vmem [shape: bf16[2,32,32], index: 6, kind: input, shape index: {}]   ;;  %s2160_s7 = inlined_call_operand.vmem [shape: f32[2,1,32], index: 7, kind: input, shape index: {}]   ;;  %s2161_s8 = inlined_call_operand.vmem [shape: f32[2,1,32], index: 8, kind: input, shape index: {}]   ;;  %s2162_s9 = inlined_call_operand.vmem [shape: f32[2,1,32], index: 9, kind: input, shape index: {}]   ;;  %s2163_s10 = inlined_call_operand.vmem [shape: bf16[2,32,128], index: 10, kind: input, shape index: {}]   ;;  %s2164_s11 = inlined_call_operand.vmem [shape: f32[2,1,128], index: 11, kind: input, shape index: {}]   ;;  %s2165_s12 = inlined_call_operand.vmem [shape: bf16[2,128,32], index: 12, kind: input, shape index: {}]   ;;  %s2166_s13 = inlined_call_operand.vmem [shape: f32[2,1,32], index: 13, kind: input, shape index: {}]   ;;  %s2167_s14 = inlined_call_operand.hbm [shape: f32[2,8,32], index: 14, kind: output, shape index: {}]  }
   0x1   :  { %2183 = sst [smem:[#allocation18_spill]] %s2153_s0 }
   0x2   :  { %2184 = sst [smem:[#allocation19_spill]] %s2154_s1 }
   0x3   :  { %2185 = sst [smem:[#allocation20_spill]] %s2157_s4 }
   0x4   :  { %2186 = sst [smem:[#allocation21_spill]] %s2159_s6 }
   0x5   :  { %2187 = sst [smem:[#allocation22_spill]] %s2161_s8 }
   0x6   :  { %2188 = sst [smem:[#allocation23_spill]] %s2165_s12 }
   0x7   :  { %2189 = sst [smem:[#allocation24_spill]] %s2167_s14 }
   0x8   :  { %19 = vsyncpa [#allocation3], 0 }
   0x9   :  { %21 = vsyncpa [#allocation3 + $0x1], 0  ;;  %s1844_s29 = smov 0   ;;  %s1846_s30 = smov 0  }
   0xa   :  { %s1848_s15 = smov 0   ;;  %s1850_s16 = smov 0  }
   0xb   :  { %s1852_s17 = smov 0   ;;  %s1854_s18 = smov 0  }
   0xc   :  { %s1856_s19 = smov 0   ;;  %s1858_s20 = smov 0  }
   0xd LB: > { %2190 = sst [smem:[#allocation5_spill]] %s1723_s29  ;;  %s1430_s21 = sadd.s32 4294967295, %s1751_s20   ;;  %s1751_s20 = sphi %s1858_s20, %s27_s20   ;;  %s1747_s19 = sphi %s1856_s19, %s2232_s19   ;;  %s1743_s18 = sphi %s1854_s18, %s2231_s18   ;;  %s1739_s17 = sphi %s1852_s17, %s2230_s17   ;;  %s1735_s16 = sphi %s1850_s16, %s2229_s16   ;;  %s1731_s15 = sphi %s1848_s15, %s2228_s15   ;;  %s1727_s30 = sphi %s1846_s30, %s2227_s30   ;;  %s1723_s29 = sphi %s1844_s29, %s2226_s29  }
   0xe   : > { %2191 = sst [smem:[#allocation6_spill]] %s1727_s30  ;;  %s1431_s22 = sadd.s32 4294967294, %s1751_s20  }
   0xf   : > { %2192 = sst [smem:[#allocation7_spill]] %s1731_s15  ;;  %s36_s23 = sadd.s32 1, %s1743_s18 }
  0x10   : > { %2193 = sst [smem:[#allocation8_spill]] %s1735_s16  ;;  %p37_p0 = scmp.ge.s32.totalorder %s36_s23, 2 }
  0x11   : > { %2194 = sst [smem:[#allocation9_spill]] %s1739_s17  ;;  %s39_s24 = sadd.s32 1, %s1747_s19 }
  0x12   : > { %2195 = sst [smem:[#allocation10_spill]] %s1743_s18  ;;  %p415_p1 = scmp.ne.s32.totalorder %s1731_s15, %s1727_s30 }
  0x13   : > { %2196 = sst [smem:[#allocation11_spill]] %s1747_s19  ;;  %p416_p2 = scmp.eq.s32.totalorder %s1430_s21, 3 }
  0x14   : > { %2197 = sst [smem:[#allocation12_spill]] %s1751_s20  ;;  %s2234_s23 = smov (%p37_p0, %s36_s23), 0 }
  0x15   : > { %2198 = sst [smem:[#allocation13_spill]] %s2234_s23  ;;  %s2236_s24 = smov (!%p37_p0, %s39_s24), %s1747_s19 }
  0x16   : > { %p1893_p3 = por %p416_p2, %p415_p1  ;;  %p421_p4 = scmp.ne.s32.totalorder %s1727_s30, %s1723_s29 }
  0x17   : > { %p41_p5 = scmp.ge.s32.totalorder %s2236_s24, 2  ;;  %p422_p6 = scmp.eq.s32.totalorder %s1431_s22, 3 }
  0x18   : > { %s2199_s25 = scalar_select %p1893_p3, 1, 0 }
  0x19   : > { %p1434_p7 = scmp.ge.s32.totalorder %s1751_s20, 1  ;;  %p530_p8 = scmp.lt.s32.totalorder %s1751_s20, 5 }
  0x1a   : > { %2200 = sst [smem:[#allocation14_spill]] %s2199_s25  ;;  %s2238_s24 = smov (%p41_p5, %s2236_s24), 0 }
  0x1b   : > { %2201 = sst [smem:[#allocation15_spill]] %s2238_s24  ;;  %p1903_p9 = por %p422_p6, %p421_p4 }
  0x1c   : > { %p531_p10 = pnand %p1434_p7, %p530_p8  ;;  %s402_s27 = ssub.s32 %s1747_s19, %s2238_s24 }
  0x1d   : > { %s2202_s26 = scalar_select %p1903_p9, 1, 0 }
  0x1e   : > { %s405_s28 = sadd.s32 1, %s1731_s15  ;;  %p403_p11 = scmp.eq.s32.totalorder %s402_s27, 0 }
  0x1f   : > { %2203 = sst [smem:[#allocation16_spill]] %s2202_s26  ;;  %534 = sbr.rel (%p531_p10) target bundleno = 2381 (0x94d), region = 76 }
  0x20   : > { %s1911_s21 = scalar_select %p403_p11, %s1731_s15, %s405_s28  }
  0x21   : > { %s2172_s22 = sand.u32 (!%p531_p10), 1, %s1727_s30   ;;  %p619_p12 = scmp.lt.s32.totalorder (!%p531_p10), %s1739_s17, 1 }
  0x22   : > { %2204 = sst [smem:[#allocation17_spill]] %s1911_s21  ;;  %s1435_s23 = sshll.u32 (!%p531_p10), %s2172_s22, 3 }
  0x23   : > { %p623_p13 = scmp.lt.s32.totalorder (!%p531_p10), %s1735_s16, 1  ;;  %s2205_s0 = sld [smem:[#allocation18_spill]] (!%p531_p10) }
  0x24   : > { %s620_s18 = scalar_select %p619_p12, %s1739_s17, 1 }
  0x25   : > { %s1920_s26 = scalar_select %p623_p13, %s1735_s16, 1 }
  0x26   : > { %s1436_s27 = sshll.u32 %s620_s18, 3  ;;  %s2206_s4 = sld [smem:[#allocation20_spill]] }
  0x27   : > { %s1518_s25 = sshll.u32 %s1920_s26, 4  ;;  %s2207_s6 = sld [smem:[#allocation21_spill]] }
  0x28   : > { %s1963_s18 = scalar_lea.vmem %s2163_s10, %s1518_s25  ;;  %s658_s12 = scalar_lea.vmem %s2164_s11, %s1920_s26 }
  0x29   : > { %s622_s19 = scalar_lea.vmem %s2205_s0, %s1436_s27  ;;  %s650_s0 = scalar_lea.vmem %s2162_s9, %s1920_s26 }
  0x2a   : > { %s666_s29 = scalar_lea.vmem %s2166_s13, %s1920_s26  ;;  %s2209_s15 = sld [smem:[#allocation23_spill]] }
  0x2b   : > { %s1979_s30 = scalar_lea.vmem [#allocation2], %s1435_s23  ;;  %s2210_s17 = sld [smem:[#allocation8_spill]] }
  0x2c   : > { %s1937_s1 = scalar_lea.vmem %s2206_s4, %s1518_s25 }
  0x2d   : > { %s1946_s28 = scalar_lea.vmem %s2207_s6, %s1518_s25  ;;  %s1521_s6 = sshll.u32 %s1920_s26, 6 }
  0x30   : > { %s1977_s8 = scalar_lea.vmem %s2209_s15, %s1521_s6 }
  0x31   : > { %p1445_p0 = scmp.ne.s32.totalorder %s2210_s17, 0 }
  0x32   : > { %s2211_s16 = sld [smem:[#allocation19_spill]] (!%p1445_p0) }
  0x33   : > { %671 = sbr.rel (%p1445_p0) target bundleno = 61 (0x3d), region = 80 }
  0x38   : > { %v672_v0 = vld [vmem:[%s622_s19] sm:$0xff]  ;;  %vm675_vm0 = vcmask 261120  }
  0x39   : > { %v673_v1 = vld [vmem:[%s2211_s16] sm:$0xff] }
  0x3a   : > { %v674_v2 = vadd.f32 %v673_v1, %v672_v0 }
  0x3c   : > { %676 = vst.msk [vmem:[%s1979_s30] sm:$0xff] %vm675_vm0, %v674_v2 }
  0x3d PF: > { %vm680_vm1 = vcmask 261120   ;;  %v1753_v5 = vmov 32.0   ;;  %v1523_v17 = vld [vmem:[%s1937_s1 + $0x8] sm:$0xff]  ;;  %v1522_v18 = vld [vmem:[%s1937_s1] sm:$0xff]  ;;  %s2212_s1 = scalar_lea.vmem %s2155_s2, %s1920_s26  ;;  %s2213_s24 = scalar_lea.vmem %s2156_s3, %s1920_s26  ;;  %vm804_vm6 = vcmask 1043456   ;;  %vm765_vm7 = vcmask 64512  }
  0x3e   : > { %1631 = vrcp.f32 %v1753_v5  ;;  %748 = vmatpush.bf16.msra.mxu0 %v1523_v17  ;;  %v1623_v28 = vld [vmem:[%s2212_s1] ss:$0 sm:$0xff]  ;;  %s2214_s22 = scalar_lea.vmem %s2158_s5, %s1920_s26  ;;  %s1754_s14 = smov 88   ;;  %v755_v50 = vlaneseq  ;;  %v1759_v54 = vmov -1e+09   ;;  %vm1008_vm9 = vcmask 130048  }
  0x3f   : > { %v1624_v31 = vld [vmem:[%s2213_s24] ss:$0 sm:$0xff]  ;;  %s1755_s20 = smov 64   ;;  %s1756_s17 = smov 96   ;;  %vm1010_vm10 = vcmask 195584  }
  0x40   : > { %v1625_v35 = vld [vmem:[%s2214_s22] ss:$0 sm:$0xff]  ;;  %s1757_s4 = smov 72   ;;  %s1758_s25 = smov 80   ;;  %v756_v51 = vshrl.u32 %v755_v50, 7  ;;  %v758_v52 = vand.u32 127, %v755_v50 }
  0x41   : > { %s1760_s16 = smov 120   ;;  %s1761_s6 = smov 104  }
  0x42   : > { %749 = vmatpush.bf16.msra.mxu0 %v1522_v18  ;;  %vm759_vm8 = vcmp.ge.s32.totalorder %v756_v51, %v758_v52  ;;  %s1762_s15 = smov 112   ;;  %s1763_s1 = smov 40  }
  0x43   : > { %v1987_v3 = vld [vmem:[%s1979_s30] sm:$0xff]  ;;  %v760_v55 = vsel %vm759_vm8, 0.0, %v1759_v54  ;;  %s1764_s19 = smov 48   ;;  %s1765_s23 = smov 56  }
  0x44   : > { %v681_v4 = vsel %vm680_vm1, %v1987_v3, 0.0  ;;  %v1632_v6 = vpop.eup %1631  ;;  %s1766_s24 = smov 16   ;;  %s1767_s27 = smov 8  }
  0x45   : > { %682 = vadd.xlane.f32.xlu0 %v681_v4  ;;  %v685_v7 = vmul.f32 32.0, %v1632_v6  ;;  %vm689_vm2 = vweird.f32 %v1632_v6  ;;  %s1768_s21 = smov 24  }
  0x47   : > { %v686_v8 = vsub.f32 1.0, %v685_v7 }
  0x49   : > { %v687_v9 = vmul.f32 %v1632_v6, %v686_v8 }
  0x4b   : > { %v688_v10 = vadd.f32 %v1632_v6, %v687_v9 }
  0x4d   : > { %v1991_v11 = vsel %vm689_vm2, %v1632_v6, %v688_v10 }
  0xb8   : > { %v683_v12 = vpop.xlane.xlu0 %682 }
  0xb9   : > { %v691_v13 = vmul.f32 %v1991_v11, %v683_v12 }
  0xbb   : > { %v692_v14 = vsub.f32 %v1987_v3, %v691_v13 }
  0xbd   : > { %v693_v15 = vmul.f32 %v692_v14, %v692_v14 }
  0xbf   : > { %v694_v16 = vsel %vm680_vm1, %v693_v15, 0.0 }
  0xc0   : > { %695 = vadd.xlane.f32.xlu0 %v694_v16 }
 0x133   : > { %v696_v19 = vpop.xlane.xlu0 %695 }
 0x134   : > { %v697_v20 = vmul.f32 %v696_v19, %v1991_v11 }
 0x136   : > { %v698_v21 = vadd.f32 1e-05, %v697_v20 }
 0x138   : > { %1633 = vrsqrt.f32 %v698_v21  ;;  %vm705_vm4 = vweird.f32 %v698_v21 }
 0x13e   : > { %v1634_v22 = vpop.eup %1633 }
 0x13f   : > { %v700_v23 = vmul.f32 %v1634_v22, %v698_v21  ;;  %vm706_vm3 = vweird.f32 %v1634_v22 }
 0x140   : > { %vm707_vm5 = vmor %vm705_vm4, %vm706_vm3 }
 0x141   : > { %v701_v24 = vmul.f32 %v1634_v22, %v700_v23 }
 0x143   : > { %v702_v25 = vmul.f32 0.5, %v701_v24 }
 0x145   : > { %v703_v26 = vsub.f32 1.5, %v702_v25 }
 0x147   : > { %v704_v27 = vmul.f32 %v1634_v22, %v703_v26 }
 0x149   : > { %v708_v29 = vsel %vm707_vm5, %v1634_v22, %v704_v27 }
 0x14a   : > { %v709_v30 = vmul.f32 %v708_v29, %v692_v14 }
 0x14c   : > { %v713_v32 = vmul.f32 %v1623_v28, %v709_v30 }
 0x14e   : > { %v717_v33 = vadd.f32 %v1624_v31, %v713_v32 }
 0x150   : > { %v718_v34 = vpack.c.bf16 %v717_v33, %v717_v33 }
 0x152   : > { %1454 = vmatmul.msk.bf16.vlgmr.msra.gmra.mxu0 %vm680_vm1, %v718_v34 }
 0x1cf   : > { %v751_v36 = vpop.f32.mrf.mxu0 }
 0x1d0   : > { %v752_v37 = vadd.f32 %v1625_v35, %v751_v36 }
 0x1d2   : > { %v2015_v38 = vpack.c.bf16 %v752_v37, %v752_v37 }
 0x1d4   : > { %823 = vrot.lane.b32.xlu0 %v2015_v38, %s1754_s14  ;;  %799 = vrot.lane.b32.xlu2 %v2015_v38, %s1755_s20  ;;  %s2215_s20 = scalar_lea.vmem %s2160_s7, %s1920_s26  ;;  %s1237_s14 = sshll.u32 %s1979_s30, 4  ;;  %s1238_s14 = int_to_ptr.vmem [resolvable:$true] %s1237_s14 }
 0x1d5   : > { %763 = vrot.lane.b32.xlu1 %v2015_v38, %s1756_s17  ;;  %s2216_s17 = sld [smem:[#allocation22_spill]] }
 0x1d7   : > { %v753_v39 = vpop.f32.mrf.mxu0 }
 0x1dc   : > { %939 = vrot.lane.b32.xlu0 %v2015_v38, %s1757_s4  ;;  %s2217_s4 = scalar_lea.vmem %s2216_s17, %s1920_s26 }
 0x1e4   : > { %881 = vrot.lane.b32.xlu0 %v2015_v38, %s1758_s25 }
 0x22e   : > { %v800_v40 = vpop.permute.xlu2 %799 }
 0x22f   : > { %v806_v41 = vsel %vm804_vm6, %v800_v40, 0 }
 0x230   : > { %815 = vmatpush.bf16.msra.mxu2 %v806_v41 }
 0x246   : > { %v824_v42 = vpop.permute.xlu0 %823 }
 0x247   : > { %v764_v43 = vpop.permute.xlu1 %763  ;;  %v829_v44 = vsel %vm765_vm7, %v824_v42, 0 }
 0x248   : > { %v770_v45 = vsel %vm765_vm7, %v764_v43, 0  ;;  %838 = vmatpush.bf16.xpose.msrb.mxu2 %v829_v44 }
 0x249   : > { %779 = vmatpush.bf16.xpose.msra.mxu1 %v770_v45 }
 0x24e   : > { %v940_v46 = vpop.permute.xlu0 %939 }
 0x24f   : > { %v945_v47 = vsel %vm765_vm7, %v940_v46, 0 }
 0x250   : > { %1455 = vmatmul.msk.bf16.vlgmr.msra.gmra.mxu1 %vm765_vm7, %v2015_v38  ;;  %954 = vmatpush.bf16.xpose.msra.mxu3 %v945_v47 }
 0x256   : > { %v882_v48 = vpop.permute.xlu0 %881 }
 0x257   : > { %v887_v49 = vsel %vm765_vm7, %v882_v48, 0 }
 0x258   : > { %896 = vmatpush.bf16.xpose.msrb.mxu0 %v887_v49 }
 0x2cd   : > { %v781_v53 = vpop.f32.mrf.mxu1 }
 0x2ce   : > { %v785_v56 = vmul.f32 0.35355338, %v781_v53 }
 0x2d0   : > { %v786_v57 = vadd.f32 %v785_v56, %v760_v55 }
 0x2d2   : > { %v787_v58 = vsel %vm765_vm7, %v786_v57, -inf }
 0x2d3   : > { %788 = vmax.xlane.f32.xlu1 %v787_v58 }
 0x2d5   : > { %v783_v59 = vpop.f32.mrf.mxu1 }
 0x346   : > { %v789_v60 = vpop.xlane.xlu1 %788 }
 0x347   : > { %v790_v61 = vsub.f32 %v786_v57, %v789_v60 }
 0x349   : > { %v791_v62 = vmul.f32 1.442695, %v790_v61 }
 0x34b   : > { %1635 = vpow2.f32 %v791_v62 }
 0x351   : > { %v1636_v63 = vpop.eup %1635 }
 0x352   : > { %v793_v0 = vsel %vm765_vm7, %v1636_v63, 0.0 }
 0x353   : > { %794 = vadd.xlane.f32.xlu2 %v793_v0 }
 0x36b   : > { %821 = vrot.lane.b32.xlu2 %v2015_v38, %s1760_s16 }
 0x373   : > { %937 = vrot.lane.b32.xlu2 %v2015_v38, %s1761_s6 }
 0x37b   : > { %879 = vrot.lane.b32.xlu2 %v2015_v38, %s1762_s15  ;;  %s2218_s15 = sld [smem:[#allocation9_spill]] }
 0x3c6   : > { %v795_v1 = vpop.xlane.xlu2 %794 }
 0x3c7   : > { %1637 = vrcp.f32 %v795_v1 }
 0x3cd   : > { %v1638_v2 = vpop.eup %1637 }
 0x3ce   : > { %v822_v4 = vpop.permute.xlu2 %821  ;;  %v797_v5 = vmul.f32 %v1638_v2, %v1636_v63  ;;  %v1525_v2 = vld [vmem:[%s1946_s28 + $0x8] sm:$0xff] }
 0x3cf   : > { %1042 = vmatpush.bf16.msra.mxu0 %v1525_v2 }
 0x3d0   : > { %v798_v6 = vpack.c.bf16 %v797_v5, %v797_v5 }
 0x3d2   : > { %1456 = vmatmul.msk.bf16.vlgmr.msra.gmra.mxu2 %vm765_vm7, %v798_v6 }
 0x3d6   : > { %v938_v7 = vpop.permute.xlu2 %937 }
 0x3d7   : > { %1461 = vmatmul.msk.bf16.vlgmr.msra.gmra.mxu3 %vm765_vm7, %v938_v7 }
 0x3de   : > { %v880_v8 = vpop.permute.xlu2 %879 }
 0x3df   : > { %1459 = vmatmul.msk.bf16.vlgmr.msrb.gmra.mxu0 %vm765_vm7, %v880_v8 }
 0x3e2   : > { %1457 = vmatmul.msk.bf16.vlgmr.msrb.gmra.mxu2 %vm765_vm7, %v822_v4  ;;  %v1524_v4 = vld [vmem:[%s1946_s28] sm:$0xff] }
 0x3e3   : > { %1043 = vmatpush.bf16.msra.mxu0 %v1524_v4 }
 0x455   : > { %v2038_v9 = vpop.f32.mrf.mxu2 }
 0x45a   : > { %v956_v10 = vpop.f32.mrf.mxu3 }
 0x45b   : > { %v960_v12 = vmul.f32 0.35355338, %v956_v10 }
 0x45c   : > { %v898_v13 = vpop.f32.mrf.mxu0 }
 0x45d   : > { %v902_v14 = vmul.f32 0.35355338, %v898_v13  ;;  %v819_v15 = vpop.f32.mrf.mxu2  ;;  %v961_v16 = vadd.f32 %v960_v12, %v760_v55 }
 0x45f   : > { %v962_v17 = vsel %vm765_vm7, %v961_v16, -inf  ;;  %v903_v18 = vadd.f32 %v902_v14, %v760_v55  ;;  %v1626_v14 = vld [vmem:[%s2215_s20] ss:$0 sm:$0xff] }
 0x460   : > { %963 = vmax.xlane.f32.xlu0 %v962_v17 }
 0x461   : > { %v904_v19 = vsel %vm765_vm7, %v903_v18, -inf }
 0x462   : > { %v958_v20 = vpop.f32.mrf.mxu3  ;;  %905 = vmax.xlane.f32.xlu2 %v904_v19 }
 0x464   : > { %v900_v21 = vpop.f32.mrf.mxu0 }
 0x465   : > { %v840_v22 = vpop.f32.mrf.mxu2 }
 0x466   : > { %v844_v23 = vmul.f32 0.35355338, %v840_v22 }
 0x468   : > { %v845_v24 = vadd.f32 %v844_v23, %v760_v55 }
 0x46a   : > { %v846_v25 = vsel %vm765_vm7, %v845_v24, -inf }
 0x46b   : > { %847 = vmax.xlane.f32.xlu1 %v846_v25  ;;  %v1526_v25 = vld [vmem:[%s1963_s18] sm:$0xff] }
 0x46d   : > { %v842_v26 = vpop.f32.mrf.mxu2 }
 0x47a   : > { %974 = vrot.lane.b32.xlu2 %v2015_v38, %s1763_s1 }
 0x4d3   : > { %v964_v37 = vpop.xlane.xlu0 %963 }
 0x4d4   : > { %v965_v39 = vsub.f32 %v961_v16, %v964_v37 }
 0x4d5   : > { %v906_v27 = vpop.xlane.xlu2 %905 }
 0x4d6   : > { %v907_v28 = vsub.f32 %v903_v18, %v906_v27  ;;  %v966_v40 = vmul.f32 1.442695, %v965_v39 }
 0x4d8   : > { %v908_v29 = vmul.f32 1.442695, %v907_v28 }
 0x4da   : > { %1639 = vpow2.f32 %v908_v29 }
 0x4dd   : > { %v975_v50 = vpop.permute.xlu2 %974 }
 0x4de   : > { %v848_v30 = vpop.xlane.xlu1 %847  ;;  %v980_v54 = vsel %vm804_vm6, %v975_v50, 0 }
 0x4df   : > { %v849_v31 = vsub.f32 %v845_v24, %v848_v30  ;;  %v1527_v24 = vld [vmem:[%s1963_s18 + $0x8] sm:$0xff] }
 0x4e0   : > { %v1640_v32 = vpop.eup %1639 }
 0x4e1   : > { %v850_v33 = vmul.f32 1.442695, %v849_v31  ;;  %v910_v34 = vsel %vm765_vm7, %v1640_v32, 0.0 }
 0x4e2   : > { %911 = vadd.xlane.f32.xlu0 %v910_v34  ;;  %v1627_v34 = vld [vmem:[%s2217_s4] ss:$0 sm:$0xff] }
 0x4e3   : > { %1641 = vpow2.f32 %v850_v33 }
 0x4e4   : > { %1643 = vpow2.f32 %v966_v40 }
 0x4e9   : > { %v1642_v35 = vpop.eup %1641 }
 0x4ea   : > { %v852_v36 = vsel %vm765_vm7, %v1642_v35, 0.0  ;;  %v1644_v41 = vpop.eup %1643 }
 0x4eb   : > { %853 = vadd.xlane.f32.xlu1 %v852_v36  ;;  %v968_v42 = vsel %vm765_vm7, %v1644_v41, 0.0  ;;  %v1628_v36 = vld [vmem:[%s650_s0] ss:$0 sm:$0xff] }
 0x4f6   : > { %916 = vrot.lane.b32.xlu0 %v2015_v38, %s1764_s19 }
 0x504   : > { %858 = vrot.lane.b32.xlu1 %v2015_v38, %s1765_s23 }
 0x52e   : > { %969 = vadd.xlane.f32.xlu1 %v968_v42  ;;  %v1534_v42 = vld [vmem:[%s1977_s8 + $0x30] sm:$0xff] }
 0x555   : > { %v912_v43 = vpop.xlane.xlu0 %911 }
 0x556   : > { %1645 = vrcp.f32 %v912_v43  ;;  %v1533_v43 = vld [vmem:[%s1977_s8 + $0x28] sm:$0xff] }
 0x55c   : > { %v1646_v44 = vpop.eup %1645 }
 0x55d   : > { %v914_v45 = vmul.f32 %v1646_v44, %v1640_v32  ;;  %v1532_v44 = vld [vmem:[%s1977_s8 + $0x20] sm:$0xff] }
 0x55e   : > { %v854_v47 = vpop.xlane.xlu1 %853 }
 0x55f   : > { %v915_v49 = vpack.c.bf16 %v914_v45, %v914_v45  ;;  %1647 = vrcp.f32 %v854_v47  ;;  %v1531_v45 = vld [vmem:[%s1977_s8 + $0x18] sm:$0xff]  ;;  %v1529_v47 = vld [vmem:[%s1977_s8 + $0x8] sm:$0xff] }
 0x565   : > { %v1648_v38 = vpop.eup %1647 }
 0x566   : > { %v856_v51 = vmul.f32 %v1648_v38, %v1642_v35  ;;  %v1528_v38 = vld [vmem:[%s1977_s8] sm:$0xff] }
 0x568   : > { %v917_v46 = vpop.permute.xlu0 %916  ;;  %v857_v55 = vpack.c.bf16 %v856_v51, %v856_v51 }
 0x569   : > { %v922_v48 = vsel %vm804_vm6, %v917_v46, 0  ;;  %v1530_v46 = vld [vmem:[%s1977_s8 + $0x10] sm:$0xff] }
 0x56a   : > { %931 = vmatpush.bf16.msrb.mxu1 %v922_v48  ;;  %v1629_v48 = vld [vmem:[%s658_s12] ss:$0 sm:$0xff]  ;;  %s1515_s12 = sshll.u32 %s2218_s15, 3 }
 0x56d   : > { %1460 = vmatmul.msk.bf16.vlgmr.msrb.gmra.mxu1 %vm765_vm7, %v915_v49 }
 0x56e   : > { %1112 = vmatpush.bf16.msra.mxu1 %v1527_v24 }
 0x572   : > { %1113 = vmatpush.bf16.msra.mxu1 %v1526_v25 }
 0x576   : > { %v859_v52 = vpop.permute.xlu1 %858 }
 0x577   : > { %v864_v53 = vsel %vm804_vm6, %v859_v52, 0 }
 0x578   : > { %873 = vmatpush.bf16.msra.mxu2 %v864_v53 }
 0x57b   : > { %1458 = vmatmul.msk.bf16.vlgmr.msra.gmra.mxu2 %vm765_vm7, %v857_v55 }
 0x57c   : > { %989 = vmatpush.bf16.msrb.mxu2 %v980_v54 }
 0x5a1   : > { %v970_v56 = vpop.xlane.xlu1 %969 }
 0x5a2   : > { %1649 = vrcp.f32 %v970_v56 }
 0x5a8   : > { %v1650_v57 = vpop.eup %1649 }
 0x5a9   : > { %v972_v58 = vmul.f32 %v1650_v57, %v1644_v41  ;;  %v1535_v41 = vld [vmem:[%s1977_s8 + $0x38] sm:$0xff]  ;;  %s2219_s8 = sld [smem:[#allocation6_spill]] }
 0x5aa   : > { %1209 = vmatpush.bf16.msrb.mxu3 %v1535_v41 }
 0x5ab   : > { %v973_v59 = vpack.c.bf16 %v972_v58, %v972_v58 }
 0x5ad   : > { %1462 = vmatmul.msk.bf16.vlgmr.msrb.gmra.mxu2 %vm765_vm7, %v973_v59 }
 0x5ae   : > { %1210 = vmatpush.bf16.msrb.mxu3 %v1534_v42 }
 0x5af   : > { %s2222_s28 = sand.u32 1, %s2219_s8  }
 0x5b0   : > { %s1225_s18 = scalar_lea.sflag [#allocation3], %s2222_s28 }
 0x5b2   : > { %1211 = vmatpush.bf16.msrb.mxu3 %v1533_v43 }
 0x5b6   : > { %1212 = vmatpush.bf16.msrb.mxu3 %v1532_v44 }
 0x5ba   : > { %1213 = vmatpush.bf16.msrb.mxu3 %v1531_v45 }
 0x5be   : > { %1214 = vmatpush.bf16.msrb.mxu3 %v1530_v46 }
 0x5c2   : > { %1215 = vmatpush.bf16.msrb.mxu3 %v1529_v47 }
 0x5c6   : > { %1216 = vmatpush.bf16.msrb.mxu3 %v1528_v38 }
 0x5ea   : > { %v933_v60 = vpop.f32.mrf.mxu1 }
 0x5eb   : > { %1000 = vrot.lane.b32.xlu0 %v933_v60, %s1766_s24 }
 0x5f2   : > { %v935_v61 = vpop.f32.mrf.mxu1 }
 0x5fe   : > { %v875_v62 = vpop.f32.mrf.mxu2 }
 0x5ff   : > { %996 = vrot.lane.b32.xlu2 %v875_v62, %s1767_s27 }
 0x606   : > { %v877_v63 = vpop.f32.mrf.mxu2 }
 0x630   : > { %v991_v0 = vpop.f32.mrf.mxu2 }
 0x631   : > { %1004 = vrot.lane.b32.xlu2 %v991_v0, %s1768_s21  ;;  %s2221_s21 = sld [smem:[#allocation24_spill]] }
 0x637   : > { %s1235_s22 = scalar_lea.hbm %s2221_s21, %s1515_s12  ;;  %s1677_s25 = scalar_lea.hbm %s2221_s21, 16 }
 0x638   : > { %v993_v1 = vpop.f32.mrf.mxu2  ;;  %s1239_s20 = sshll.u32 %s1235_s22, 4  ;;  %s1240_s20 = int_to_ptr.hbm [resolvable:$true] %s1239_s20 }
 0x639   : > { %s1671_s17 = sshra.s32 %s1240_s20, 4  ;;  %s1672_s17 = int_to_ptr.hbm [resolvable:$true] %s1671_s17 }
 0x63a   : > { %s1673_s26 = scalar_lea.hbm %s1672_s17, 8  ;;  %p1678_p5 = scmp.lt.s32.totalorder %s1672_s17, %s2221_s21 }
 0x63b   : > { %p1674_p1 = scmp.ne.s32.totalorder %s1672_s17, %s1673_s26  ;;  %p1679_p6 = scmp.lt.s32.totalorder %s1677_s25, %s1673_s26 }
 0x63d   : > { %p1675_p2 = pnand %p1674_p1, %p1893_p3  ;;  %p1680_p7 = por %p1679_p6, %p1678_p5 }
 0x63f   : > { %p1676_p4 = pneg %p1675_p2 }
 0x641   : > { %p1681_p8 = pnand %p1680_p7, %p1676_p4 }
 0x659   : > { %v997_v5 = vpop.permute.xlu2 %996 }
 0x65a   : > { %v1007_v7 = vsel %vm765_vm7, %v2038_v9, %v997_v5  ;;  %v1630_v5 = vld [vmem:[%s666_s29] ss:$0 sm:$0xff] }
 0x65d   : > { %v1001_v6 = vpop.permute.xlu0 %1000 }
 0x65e   : > { %v1009_v8 = vsel %vm1008_vm9, %v1007_v7, %v1001_v6 }
 0x68b   : > { %v1005_v10 = vpop.permute.xlu2 %1004 }
 0x68c   : > { %v1011_v12 = vsel %vm1010_vm10, %v1009_v8, %v1005_v10 }
 0x68d   : > { %v1012_v13 = vpack.c.bf16 %v1011_v12, %v1011_v12 }
 0x68f   : > { %1471 = vmatmul.msk.bf16.vlgmr.msra.gmra.mxu0 %vm680_vm1, %v1012_v13 }
 0x70c   : > { %v1045_v15 = vpop.f32.mrf.mxu0 }
 0x70d   : > { %v1046_v16 = vadd.f32 %v1626_v14, %v1045_v15 }
 0x70f   : > { %v2066_v17 = vadd.f32 %v1046_v16, %v1987_v3 }
 0x711   : > { %v1052_v9 = vsel %vm680_vm1, %v2066_v17, 0.0 }
 0x712   : > { %1053 = vadd.xlane.f32.xlu0 %v1052_v9 }
 0x714   : > { %v1047_v18 = vpop.f32.mrf.mxu0 }
 0x785   : > { %v1054_v19 = vpop.xlane.xlu0 %1053 }
 0x786   : > { %v1055_v20 = vmul.f32 %v1054_v19, %v1991_v11 }
 0x788   : > { %v1056_v21 = vsub.f32 %v2066_v17, %v1055_v20 }
 0x78a   : > { %v1057_v22 = vmul.f32 %v1056_v21, %v1056_v21 }
 0x78c   : > { %v1058_v23 = vsel %vm680_vm1, %v1057_v22, 0.0 }
 0x78d   : > { %1059 = vadd.xlane.f32.xlu1 %v1058_v23 }
 0x800   : > { %v1060_v3 = vpop.xlane.xlu1 %1059 }
 0x801   : > { %v1061_v26 = vmul.f32 %v1060_v3, %v1991_v11 }
 0x803   : > { %v1062_v27 = vadd.f32 1e-05, %v1061_v26 }
 0x805   : > { %1651 = vrsqrt.f32 %v1062_v27  ;;  %vm1069_vm12 = vweird.f32 %v1062_v27 }
 0x80b   : > { %v1652_v28 = vpop.eup %1651 }
 0x80c   : > { %v1064_v29 = vmul.f32 %v1652_v28, %v1062_v27  ;;  %vm1070_vm11 = vweird.f32 %v1652_v28 }
 0x80d   : > { %vm1071_vm13 = vmor %vm1069_vm12, %vm1070_vm11 }
 0x80e   : > { %v1065_v30 = vmul.f32 %v1652_v28, %v1064_v29 }
 0x810   : > { %v1066_v31 = vmul.f32 0.5, %v1065_v30 }
 0x812   : > { %v1067_v32 = vsub.f32 1.5, %v1066_v31 }
 0x814   : > { %v1068_v33 = vmul.f32 %v1652_v28, %v1067_v32 }
 0x816   : > { %v1072_v11 = vsel %vm1071_vm13, %v1652_v28, %v1068_v33 }
 0x817   : > { %v1073_v35 = vmul.f32 %v1072_v11, %v1056_v21 }
 0x819   : > { %v1077_v37 = vmul.f32 %v1627_v34, %v1073_v35 }
 0x81b   : > { %v1081_v39 = vadd.f32 %v1628_v36, %v1077_v37 }
 0x81d   : > { %v1082_v40 = vpack.c.bf16 %v1081_v39, %v1081_v39 }
 0x81f   : > { %1480 = vmatmul.msk.bf16.vlgmr.msra.gmra.mxu1 %vm680_vm1, %v1082_v40 }
 0x89c   : > { %v1115_v49 = vpop.f32.mrf.mxu1 }
 0x89d   : > { %v1116_v50 = vadd.f32 %v1629_v48, %v1115_v49 }
 0x89f   : > { %v1481_v51 = vmul.f32 -1.702, %v1116_v50 }
 0x8a1   : > { %v1121_v52 = vmul.f32 1.442695, %v1481_v51 }
 0x8a3   : > { %1653 = vpow2.f32 %v1121_v52 }
 0x8a4   : > { %v1117_v53 = vpop.f32.mrf.mxu1 }
 0x8a9   : > { %v1654_v54 = vpop.eup %1653 }
 0x8aa   : > { %v1123_v55 = vadd.f32 1.0, %v1654_v54 }
 0x8ac   : > { %1655 = vrcp.f32 %v1123_v55  ;;  %v1135_v59 = vand.u32 2147483648, %v1123_v55  ;;  %v1133_v61 = vand.u32 2147483647, %v1123_v55  ;;  %vm1129_vm15 = vweird.f32 %v1123_v55 }
 0x8ae   : > { %v1136_v63 = vor.u32 1.1754944e-38, %v1135_v59  ;;  %vm1134_vm2 = vcmp.eq.f32.partialorder %v1133_v61, 8.507059e+37 }
 0x8b2   : > { %v1656_v56 = vpop.eup %1655 }
 0x8b3   : > { %v1125_v57 = vmul.f32 %v1656_v56, %v1123_v55  ;;  %vm1130_vm14 = vweird.f32 %v1656_v56 }
 0x8b4   : > { %vm1131_vm0 = vmor %vm1129_vm15, %vm1130_vm14 }
 0x8b5   : > { %v1126_v58 = vsub.f32 1.0, %v1125_v57 }
 0x8b7   : > { %v1127_v60 = vmul.f32 %v1656_v56, %v1126_v58 }
 0x8b9   : > { %v1128_v62 = vadd.f32 %v1656_v56, %v1127_v60 }
 0x8bb   : > { %v1132_v0 = vsel %vm1131_vm0, %v1656_v56, %v1128_v62 }
 0x8bc   : > { %v1137_v1 = vsel %vm1134_vm2, %v1136_v63, %v1132_v0 }
 0x8bd   : > { %v1139_v2 = vmul.f32 %v1137_v1, %v1116_v50 }
 0x8bf   : > { %v1140_v4 = vpack.c.bf16 %v1139_v2, %v1139_v2 }
 0x8c1   : > { %1217 = vmatmul.bf16.vlgmr.msrb.gmra.mxu3 %v1140_v4 }
 0x944   : > { %v1218_v6 = vpop.f32.mrf.mxu3 }
 0x945   : > { %v1219_v7 = vadd.f32 %v1630_v5, %v1218_v6 }
 0x947   : > { %v1222_v8 = vadd.f32 %v1219_v7, %v2066_v17 }
 0x949   : > { %1223 = vst.msk [vmem:[%s1979_s30] sm:$0xff] %vm680_vm1, %v1222_v8 }
 0x94a   : > { %1684 = shalt.err (!%p1681_p8)
}
 0x94b   : > { %1536 = dma.vmem_to_hbm [thread:$0]  (%p1893_p3), %s1238_s14, 128, %s1240_s20, %s1225_s18  }
 0x94c   : > { %v1220_v10 = vpop.f32.mrf.mxu3 }
 0x94d PF: > { %s2223_s30 = sld [smem:[#allocation12_spill]] }
 0x94e   : > { %s2224_s6 = sld [smem:[#allocation5_spill]] }
 0x953   : > { %p1542_p10 = scmp.ge.s32.totalorder %s2223_s30, 2 }
 0x954   : > { %s1251_s8 = sand.u32 1, %s2224_s6  }
 0x955   : > { %p1539_p11 = pnand %p1542_p10, %p1903_p9  ;;  %s1252_s12 = scalar_lea.sflag [#allocation3], %s1251_s8 }
 0x957   : > { %p1540_p12 = pneg %p1539_p11 }
 0x959   : > { %1718 = dma.done.wait (%p1540_p12), %s1252_s12, 128  }
 0x95a   : > { %1720 = vsyncadd (%p1540_p12), %s1252_s12, 4294967168  ;;  %s27_s20 = sadd.s32 1, %s2223_s30   ;;  %s2226_s29 = sld [smem:[#allocation6_spill]] }
 0x95b   : > { %p24_p13 = scmp.ge.s32.totalorder %s27_s20, 6   ;;  %s2227_s30 = sld [smem:[#allocation7_spill]] }
 0x95c   : > { %s2228_s15 = sld [smem:[#allocation17_spill]] }
 0x95d   : > { %s2229_s16 = sld [smem:[#allocation10_spill]]  ;;  %26 = sbr.rel (!%p24_p13) target bundleno = 13 (0xd), region = 151 }
 0x95e   : > { %s2230_s17 = sld [smem:[#allocation11_spill]] }
 0x95f   : > { %s2231_s18 = sld [smem:[#allocation13_spill]] }
 0x960   : > { %s2232_s19 = sld [smem:[#allocation15_spill]] }
 0x962   :  { %1258 = vsyncpa [#allocation3], 1 }
 0x963   :  { %1260 = vsyncpa [#allocation3 + $0x1], 1 }

</bundles_post_ra>
